<compile_context>
chip_gen: v6e
topology: v6e:2x2x1
jax: 0.10.0
libtpu: 0.0.40
codegen_flags: <defaults>
</compile_context>

<pallas_src>
import jax
import jax.numpy as jnp
from jax.experimental import pallas as pl
from jax.experimental.pallas import tpu as pltpu

NCLASSES = 20
HIDDEN = 50

HIDDEN_PAD = 128            # lane-dense hidden dim
CLASSES_PAD = 128           # lane-dense output dim -> unmasked stores
TILE_B_MAX = 8192           # upper bound on rows per grid step
VMEM_TILE_BUDGET = 40 << 20  # tile-sizing budget (headroom under v7x's 64 MiB)
VMEM_LIMIT_BYTES = 48 << 20  # explicit scoped-VMEM limit (> v5e/v6e defaults)
NEG_BIG = -1e30             # bias for padded classes: exp(NEG_BIG - m) -> 0


def _round_up(n, m):
    return (n + m - 1) // m * m


def _choose_tile_b(B, F):
    """VMEM-aware, batch-adaptive tile size (multiple of 8 sublanes)."""
    # Per streamed row: 2x f32 x buffers, 2x bf16 out buffers, ~4 f32 (row,128)
    # intermediates (h, logits, e, bf16 h counted generously).
    per_row = 2 * F * 4 + 2 * CLASSES_PAD * 2 + 4 * CLASSES_PAD * 4
    # Resident: padded w1/w2 (counted with 2 buffers) + slack for small refs.
    resident = 2 * F * HIDDEN_PAD * 2 + 2 * HIDDEN_PAD * CLASSES_PAD * 2 + (256 << 10)
    # TODO(synk): for in_features large enough that w1 itself overflows VMEM,
    # the F (contraction) axis would also need tiling; not needed for this spec.
    cap = (VMEM_TILE_BUDGET - resident) // per_row
    cap = max(8, min(TILE_B_MAX, (cap // 8) * 8))
    if B > 128:
        # >=2 tiles so both v7x TensorCores get work and DMA overlaps compute.
        tile_b = min(cap, _round_up((B + 1) // 2, 8))
    else:
        tile_b = min(cap, _round_up(B, 8))
    return int(tile_b)


def _mlp_softmax_kernel(x_ref, w1_ref, b1_ref, w2_ref, b2_ref, o_ref):
    # x_ref : (tile_b, F) f32     -- streamed per grid step, cast in-kernel
    # w1_ref: (F, 128) bf16, b1_ref: (1, 128) f32          (VMEM-resident)
    # w2_ref: (128, 128) bf16, b2_ref: (1, 128) f32 (-1e30 on padded classes)
    # o_ref : (tile_b, 128) bf16  -- padded, lane-dense output
    x = x_ref[...].astype(jnp.bfloat16)                               # VPU cast (free)
    h = jnp.dot(x, w1_ref[...], preferred_element_type=jnp.float32)   # (tb,128) f32
    h = jnp.maximum(h + b1_ref[...], 0.0)                             # bias + ReLU, f32
    logits = jnp.dot(h.astype(jnp.bfloat16), w2_ref[...],
                     preferred_element_type=jnp.float32)              # (tb,128) f32
    logits = logits + b2_ref[...]                                     # padded -> -1e30
    # numerically-stable softmax; padded classes underflow to exactly 0.
    m = jnp.max(logits, axis=-1, keepdims=True)
    e = jnp.exp(logits - m)
    denom = jnp.sum(e, axis=-1, keepdims=True)
    o_ref[...] = (e * pl.reciprocal(denom, approx=True)).astype(o_ref.dtype)


def pad_params(w1, b1, w2, b2):
    """Pad/cast weights once (hoisted out of the per-call path).
    w1: (in_features, 50), b1: (50,), w2: (50, 20), b2: (20,)."""
    F = w1.shape[0]
    w1p = jnp.zeros((F, HIDDEN_PAD), jnp.bfloat16).at[:, :HIDDEN].set(
        w1.astype(jnp.bfloat16))
    b1p = jnp.zeros((1, HIDDEN_PAD), jnp.float32).at[:, :HIDDEN].set(
        b1.astype(jnp.float32))
    w2p = jnp.zeros((HIDDEN_PAD, CLASSES_PAD), jnp.bfloat16).at[
        :HIDDEN, :NCLASSES].set(w2.astype(jnp.bfloat16))
    b2p = jnp.full((1, CLASSES_PAD), NEG_BIG, jnp.float32).at[:, :NCLASSES].set(
        b2.astype(jnp.float32))
    return w1p, b1p, w2p, b2p


def linear_classifier_forward(x, padded_params):
    """x: (B, in_features) f32. Returns softmax probs (B, 20) f32."""
    w1p, b1p, w2p, b2p = padded_params
    B, F = x.shape
    x = x.astype(jnp.float32)

    tile_b = _choose_tile_b(B, F)
    num_tiles = (B + tile_b - 1) // tile_b    # cdiv: last block masked by Pallas

    cost = pl.CostEstimate(
        flops=2 * B * F * HIDDEN_PAD + 2 * B * HIDDEN_PAD * CLASSES_PAD,
        transcendentals=B * CLASSES_PAD,
        bytes_accessed=(x.size * 4 + w1p.size * 2 + w2p.size * 2
                        + b1p.size * 4 + b2p.size * 4 + B * CLASSES_PAD * 2),
    )

    probs_padded = pl.pallas_call(
        _mlp_softmax_kernel,
        out_shape=jax.ShapeDtypeStruct((B, CLASSES_PAD), jnp.bfloat16),
        grid=(num_tiles,),
        in_specs=[
            pl.BlockSpec((tile_b, F), lambda i: (i, 0)),                # x: streamed f32
            pl.BlockSpec((F, HIDDEN_PAD), lambda i: (0, 0)),            # w1: resident
            pl.BlockSpec((1, HIDDEN_PAD), lambda i: (0, 0)),            # b1: resident
            pl.BlockSpec((HIDDEN_PAD, CLASSES_PAD), lambda i: (0, 0)),  # w2: resident
            pl.BlockSpec((1, CLASSES_PAD), lambda i: (0, 0)),           # b2: resident
        ],
        out_specs=pl.BlockSpec((tile_b, CLASSES_PAD), lambda i: (i, 0)),
        compiler_params=pltpu.CompilerParams(
            dimension_semantics=("parallel",),          # batch tiles across TCs
            vmem_limit_bytes=VMEM_LIMIT_BYTES),
        cost_estimate=cost,
    )(x, w1p, b1p, w2p, b2p)

    # slice off padded classes; return f32 to match the module's output dtype.
    return probs_padded[:, :NCLASSES].astype(jnp.float32)


def init_params(key, in_features):
    """Deterministic init matching nn.Linear's U(-1/sqrt(fan_in), 1/sqrt(fan_in))."""
    k1, k2, k3, k4 = jax.random.split(key, 4)
    bound1 = 1.0 / jnp.sqrt(jnp.float32(in_features))
    bound2 = 1.0 / jnp.sqrt(jnp.float32(HIDDEN))
    # stored already transposed: (in, out), equivalent to x @ weight.T + bias
    w1 = jax.random.uniform(k1, (in_features, HIDDEN), jnp.float32, -bound1, bound1)
    b1 = jax.random.uniform(k2, (HIDDEN,), jnp.float32, -bound1, bound1)
    w2 = jax.random.uniform(k3, (HIDDEN, NCLASSES), jnp.float32, -bound2, bound2)
    b2 = jax.random.uniform(k4, (NCLASSES,), jnp.float32, -bound2, bound2)
    return w1, b1, w2, b2


if __name__ == "__main__":
    key = jax.random.PRNGKey(0)
    kx, kp, kx2 = jax.random.split(key, 3)

    in_features = 32
    w1, b1, w2, b2 = init_params(kp, in_features)
    params = pad_params(w1, b1, w2, b2)   # pad/cast weights exactly once

    def ref_fwd(xx):  # f32 reference (kernel uses bf16 matmuls + approx recip)
        return jax.nn.softmax(jnp.maximum(xx @ w1 + b1, 0.0) @ w2 + b2, axis=-1)

    # small batch: single full tile
    x = jax.random.normal(kx, (8, in_features), jnp.float32)
    out = jax.block_until_ready(linear_classifier_forward(x, params))
    assert out.shape == (8, NCLASSES)
    assert jnp.allclose(jnp.sum(out, axis=-1), 1.0, atol=1e-2)
    assert jnp.allclose(out, ref_fwd(x), atol=2e-2)

    # uneven batch > 128: exercises cdiv grid, 2 parallel tiles, masked last block
    x2 = jax.random.normal(kx2, (200, in_features), jnp.float32)
    out2 = jax.block_until_ready(linear_classifier_forward(x2, params))
    assert out2.shape == (200, NCLASSES)
    assert jnp.allclose(jnp.sum(out2, axis=-1), 1.0, atol=1e-2)
    assert jnp.allclose(out2, ref_fwd(x2), atol=2e-2)

    print("KERNEL_OK")
</pallas_src>

<mosaic_0001>
module attributes {stable_mosaic.version = 11 : i64} {
  func.func @_mlp_softmax_kernel(%arg0: i32, %arg1: memref<8x32xf32, #tpu.memory_space<vmem>>, %arg2: memref<32x128xbf16, #tpu.memory_space<vmem>>, %arg3: memref<1x128xf32, #tpu.memory_space<vmem>>, %arg4: memref<128x128xbf16, #tpu.memory_space<vmem>>, %arg5: memref<1x128xf32, #tpu.memory_space<vmem>>, %arg6: memref<8x128xbf16, #tpu.memory_space<vmem>>) attributes {dimension_semantics = [#tpu.dimension_semantics<parallel>], iteration_bounds = array<i64: 1>, scalar_prefetch = 0 : i64, scratch_operands = 0 : i64, tpu.core_type = #tpu.core_type<tc>, window_params = [{transform_indices = @transform_0, window_bounds = array<i64: 8, 32>}, {pipeline_mode = #tpu.pipeline_mode<synchronous>, transform_indices = @transform_1, window_bounds = array<i64: 32, 128>}, {pipeline_mode = #tpu.pipeline_mode<synchronous>, transform_indices = @transform_2, window_bounds = array<i64: 1, 128>}, {pipeline_mode = #tpu.pipeline_mode<synchronous>, transform_indices = @transform_3, window_bounds = array<i64: 128, 128>}, {pipeline_mode = #tpu.pipeline_mode<synchronous>, transform_indices = @transform_4, window_bounds = array<i64: 1, 128>}, {transform_indices = @transform_5, window_bounds = array<i64: 8, 128>}]} {
    %c0 = arith.constant 0 : index
    %c0_0 = arith.constant 0 : index
    %0 = vector.load %arg1[%c0, %c0_0] : memref<8x32xf32, #tpu.memory_space<vmem>>, vector<8x32xf32>
    %1 = arith.truncf %0 : vector<8x32xf32> to vector<8x32xbf16>
    %c0_1 = arith.constant 0 : index
    %c0_2 = arith.constant 0 : index
    %2 = vector.load %arg2[%c0_1, %c0_2] : memref<32x128xbf16, #tpu.memory_space<vmem>>, vector<32x128xbf16>
    %cst = arith.constant dense<0.000000e+00> : vector<8x128xf32>
    %3 = tpu.matmul %1, %2, %cst {dimension_numbers = #tpu.dot_dimension_numbers<[1], [0], [0], [1], [0, 0, 1, 1], [], []>} : vector<8x32xbf16>, vector<32x128xbf16>, vector<8x128xf32> -> vector<8x128xf32>
    %c0_3 = arith.constant 0 : index
    %c0_4 = arith.constant 0 : index
    %4 = vector.load %arg3[%c0_3, %c0_4] : memref<1x128xf32, #tpu.memory_space<vmem>>, vector<1x128xf32>
    %5 = vector.broadcast %4 : vector<1x128xf32> to vector<8x128xf32>
    %6 = arith.addf %3, %5 : vector<8x128xf32>
    %cst_5 = arith.constant 0.000000e+00 : f32
    %7 = vector.broadcast %cst_5 : f32 to vector<8x128xf32>
    %8 = arith.maximumf %6, %7 : vector<8x128xf32>
    %9 = arith.truncf %8 : vector<8x128xf32> to vector<8x128xbf16>
    %c0_6 = arith.constant 0 : index
    %c0_7 = arith.constant 0 : index
    %10 = vector.load %arg4[%c0_6, %c0_7] : memref<128x128xbf16, #tpu.memory_space<vmem>>, vector<128x128xbf16>
    %cst_8 = arith.constant dense<0.000000e+00> : vector<8x128xf32>
    %11 = tpu.matmul %9, %10, %cst_8 {dimension_numbers = #tpu.dot_dimension_numbers<[1], [0], [0], [1], [0, 0, 1, 1], [], []>} : vector<8x128xbf16>, vector<128x128xbf16>, vector<8x128xf32> -> vector<8x128xf32>
    %c0_9 = arith.constant 0 : index
    %c0_10 = arith.constant 0 : index
    %12 = vector.load %arg5[%c0_9, %c0_10] : memref<1x128xf32, #tpu.memory_space<vmem>>, vector<1x128xf32>
    %13 = vector.broadcast %12 : vector<1x128xf32> to vector<8x128xf32>
    %14 = arith.addf %11, %13 : vector<8x128xf32>
    %cst_11 = arith.constant dense<0xFF800000> : vector<8xf32>
    %15 = vector.multi_reduction <maximumf>, %14, %cst_11 [1] : vector<8x128xf32> to vector<8xf32>
    %16 = vector.shape_cast %15 : vector<8xf32> to vector<8x1xf32>
    %17 = vector.broadcast %16 : vector<8x1xf32> to vector<8x128xf32>
    %18 = arith.subf %14, %17 : vector<8x128xf32>
    %19 = math.exp %18 : vector<8x128xf32>
    %cst_12 = arith.constant dense<0.000000e+00> : vector<8xf32>
    %20 = vector.multi_reduction <add>, %19, %cst_12 [1] : vector<8x128xf32> to vector<8xf32>
    %21 = vector.shape_cast %20 : vector<8xf32> to vector<8x1xf32>
    %22 = tpu.reciprocal %21 {approx = true} : vector<8x1xf32> -> vector<8x1xf32>
    %23 = vector.broadcast %22 : vector<8x1xf32> to vector<8x128xf32>
    %24 = arith.mulf %19, %23 : vector<8x128xf32>
    %25 = arith.truncf %24 : vector<8x128xf32> to vector<8x128xbf16>
    %c0_13 = arith.constant 0 : index
    %c0_14 = arith.constant 0 : index
    %26 = vector.load %arg6[%c0_13, %c0_14] : memref<8x128xbf16, #tpu.memory_space<vmem>>, vector<8x128xbf16>
    tpu.vector_store %arg6[%c0_13, %c0_14], %25 {strides = array<i32>} : memref<8x128xbf16, #tpu.memory_space<vmem>>, vector<8x128xbf16>,
    return
  }
  func.func @transform_0(%arg0: i32) -> (i32, i32) {
    %c0_i32 = arith.constant 0 : i32
    %c0_i32_0 = arith.constant 0 : i32
    return %arg0, %c0_i32 : i32, i32
  }
  func.func @transform_1(%arg0: i32) -> (i32, i32) {
    %c0_i32 = arith.constant 0 : i32
    %c0_i32_0 = arith.constant 0 : i32
    %c0_i32_1 = arith.constant 0 : i32
    return %c0_i32, %c0_i32_0 : i32, i32
  }
  func.func @transform_2(%arg0: i32) -> (i32, i32) {
    %c0_i32 = arith.constant 0 : i32
    %c0_i32_0 = arith.constant 0 : i32
    %c0_i32_1 = arith.constant 0 : i32
    return %c0_i32, %c0_i32_0 : i32, i32
  }
  func.func @transform_3(%arg0: i32) -> (i32, i32) {
    %c0_i32 = arith.constant 0 : i32
    %c0_i32_0 = arith.constant 0 : i32
    %c0_i32_1 = arith.constant 0 : i32
    return %c0_i32, %c0_i32_0 : i32, i32
  }
  func.func @transform_4(%arg0: i32) -> (i32, i32) {
    %c0_i32 = arith.constant 0 : i32
    %c0_i32_0 = arith.constant 0 : i32
    %c0_i32_1 = arith.constant 0 : i32
    return %c0_i32, %c0_i32_0 : i32, i32
  }
  func.func @transform_5(%arg0: i32) -> (i32, i32) {
    %c0_i32 = arith.constant 0 : i32
    %c0_i32_0 = arith.constant 0 : i32
    return %arg0, %c0_i32 : i32, i32
  }
}

</mosaic_0001>

<bundles_post_ra>
// kernel: tpu_custom_call.1
= control target key start
LH: loop header
LB: loop body
LE: loop exit
PB: predicated region body
PF: predicated region fallthrough
CT: control target
= control target key end

     0   :  { %10 = vsyncpa [#allocation3], 0  ;;  %s487_s0 = inlined_call_operand.hbm [shape: f32[8,32], index: 0, kind: input, shape index: {}]   ;;  %s488_s1 = inlined_call_operand.hbm [shape: bf16[32,128], index: 1, kind: input, shape index: {}]   ;;  %s489_s2 = inlined_call_operand.vmem [shape: f32[1,128], index: 2, kind: input, shape index: {}]   ;;  %s490_s3 = inlined_call_operand.hbm [shape: bf16[128,128], index: 3, kind: input, shape index: {}]   ;;  %s491_s4 = inlined_call_operand.vmem [shape: f32[1,128], index: 4, kind: input, shape index: {}]   ;;  %s492_s5 = inlined_call_operand.hbm [shape: bf16[8,128], index: 5, kind: output, shape index: {}]  }
   0x1   :  { %11 = vsyncpa [#allocation6], 0 }
   0x2   :  { %12 = vsyncpa [#allocation4], 0  ;;  %s431_s18 = smov [#allocation5]  }
   0x3   :  { %s28_s19 = sshll.u32 %s431_s18, 4  ;;  %s29_s19 = int_to_ptr.vmem [resolvable:$true] %s28_s19 }
   0x4   :  { %s353_s20 = scalar_lea.vmem %s29_s19, 256  ;;  %p358_p1 = scmp.lt.s32.totalorder %s29_s19, %s29_s19 }
   0x5   :  { %p354_p0 = scmp.ne.s32.totalorder %s29_s19, %s353_s20  ;;  %p359_p2 = scmp.lt.s32.totalorder %s353_s20, %s353_s20 }
   0x7   :  { %p360_p3 = por %p359_p2, %p358_p1 }
   0x9   :  { %p361_p4 = pnand %p360_p3, %p354_p0 }
   0xb   :  { %364 = shalt.err (!%p361_p4)
}
   0xc   :  { %s432_s21 = smov 64   ;;  %s433_s22 = smov 4  }
   0xd   :  { %34 = dma.hbm_to_vmem [thread:$0]  %s488_s1, 256, %s29_s19, [#allocation6], %s432_s21, %s432_s21, %s433_s22  }
   0xe   :  { %s434_s25 = smov [#allocation2]   ;;  %s435_s27 = smov [#allocation7]  }
   0xf   :  { %s19_s26 = sshll.u32 %s434_s25, 4  ;;  %s42_s28 = sshll.u32 %s435_s27, 4  ;;  %s20_s26 = int_to_ptr.vmem [resolvable:$true] %s19_s26  ;;  %s43_s28 = int_to_ptr.vmem [resolvable:$true] %s42_s28 }
  0x10   :  { %s373_s29 = scalar_lea.vmem %s20_s26, 128  ;;  %p378_p6 = scmp.lt.s32.totalorder %s20_s26, %s20_s26 }
  0x11   :  { %p374_p5 = scmp.ne.s32.totalorder %s20_s26, %s373_s29  ;;  %p379_p7 = scmp.lt.s32.totalorder %s373_s29, %s373_s29 }
  0x13   :  { %p380_p8 = por %p379_p7, %p378_p6 }
  0x15   :  { %p381_p9 = pnand %p380_p8, %p374_p5 }
  0x17   :  { %384 = shalt.err (!%p381_p9)
}
  0x18   :  { %22 = dma.hbm_to_vmem [thread:$0]  %s487_s0, 128, %s20_s26, [#allocation3]  }
  0x19   :  { %s393_s7 = scalar_lea.vmem %s43_s28, 1024  ;;  %p398_p11 = scmp.lt.s32.totalorder %s43_s28, %s43_s28 }
  0x1a   :  { %p394_p10 = scmp.ne.s32.totalorder %s43_s28, %s393_s7  ;;  %p399_p12 = scmp.lt.s32.totalorder %s393_s7, %s393_s7 }
  0x1c   :  { %p400_p13 = por %p399_p12, %p398_p11 }
  0x1e   :  { %p401_p0 = pnand %p400_p13, %p394_p10 }
  0x20   :  { %404 = shalt.err (!%p401_p0)
}
  0x21   :  { %48 = dma.hbm_to_vmem [thread:$0]  %s490_s3, 1024, %s43_s28, [#allocation6], %s432_s21, %s432_s21, %s433_s22  }
  0x22   :  { %425 = dma.done.wait [#allocation3], 128  }
  0x23   :  { %426 = vsyncadd [#allocation3], 4294967168 }
  0x24   :  { %427 = dma.done.wait [#allocation6], 1280  }
  0x25   :  { %428 = vsyncadd [#allocation6], 4294966016  ;;  %v436_v0 = vmov 0.0   ;;  %vm437_vm0 = vmmov 0   ;;  %v331_v1 = vld [vmem:[#allocation5 + $0x8] sm:$0xff]   ;;  %v332_v2 = vld [vmem:[#allocation5] sm:$0xff]  }
  0x26   :  { %295 = vmatprep.subr.bf16.mxu0 %v436_v0  ;;  %299 = vmatprep.mubr.msk.bf16.mxu0 %vm437_vm0, %v436_v0  ;;  %v61_v3 = vld [vmem:[#allocation2] sm:$0xff]  ;;  %v333_v4 = vld [vmem:[#allocation7 + $0x38] sm:$0xff]   ;;  %v334_v6 = vld [vmem:[#allocation7 + $0x30] sm:$0xff]   ;;  %vm86_vm1 = vcmask 261120  }
  0x27   :  { %303 = vmatprep.subr.bf16.mxu1 %v436_v0  ;;  %319 = vmatprep.mubr.msk.bf16.mxu1 %vm437_vm0, %v436_v0  ;;  %v62_v5 = vpack.c.bf16 %v61_v3, %v61_v3  ;;  %v335_v7 = vld [vmem:[#allocation7 + $0x28] sm:$0xff]   ;;  %v336_v8 = vld [vmem:[#allocation7 + $0x20] sm:$0xff]   ;;  %v337_v9 = vld [vmem:[#allocation7 + $0x18] sm:$0xff]  }
  0x28   :  { %296 = vmatpush3.bf16.msra.mxu0 %v331_v1  ;;  %304 = vmatpush3.bf16.msra.mxu1 %v333_v4  ;;  %v338_v10 = vld [vmem:[#allocation7 + $0x10] sm:$0xff]   ;;  %v339_v11 = vld [vmem:[#allocation7 + $0x8] sm:$0xff]   ;;  %v340_v12 = vld [vmem:[#allocation7] sm:$0xff]  }
  0x29   :  { %297 = vmatprep.subr.bf16.mxu0 %v436_v0  ;;  %305 = vmatprep.subr.bf16.mxu1 %v436_v0  ;;  %v270_v13 = vld [vmem:[%s489_s2] ss:$0 sm:$0xff]  ;;  %s438_s2 = smov [#allocation8]  }
  0x2a   :  { %v274_v21 = vld [vmem:[%s491_s4] ss:$0 sm:$0xff]  ;;  %s260_s11 = sshll.u32 %s438_s2, 4  ;;  %s261_s11 = int_to_ptr.vmem [resolvable:$true] %s260_s11 }
  0x2b   :  { %s405_s4 = scalar_lea.vmem %s261_s11, 64  ;;  %p410_p2 = scmp.lt.s32.totalorder %s261_s11, %s261_s11 }
  0x2c   :  { %298 = vmatpush3.bf16.msra.mxu0 %v332_v2  ;;  %306 = vmatpush3.bf16.msra.mxu1 %v334_v6  ;;  %p406_p1 = scmp.ne.s32.totalorder %s261_s11, %s405_s4  ;;  %p411_p3 = scmp.lt.s32.totalorder %s405_s4, %s405_s4 }
  0x2d   :  { %307 = vmatprep.subr.bf16.mxu1 %v436_v0 }
  0x2e   :  { %p412_p4 = por %p411_p3, %p410_p2 }
  0x2f   :  { %300 = vmatmul.mubr.msk.bf16.vlgmr.msra.gmra.mxu0 %vm86_vm1, %v62_v5 }
  0x30   :  { %308 = vmatpush3.bf16.msra.mxu1 %v335_v7  ;;  %p413_p5 = pnand %p412_p4, %p406_p1 }
  0x31   :  { %309 = vmatprep.subr.bf16.mxu1 %v436_v0 }
  0x34   :  { %310 = vmatpush3.bf16.msra.mxu1 %v336_v8 }
  0x35   :  { %311 = vmatprep.subr.bf16.mxu1 %v436_v0 }
  0x38   :  { %312 = vmatpush3.bf16.msra.mxu1 %v337_v9 }
  0x39   :  { %313 = vmatprep.subr.bf16.mxu1 %v436_v0 }
  0x3c   :  { %314 = vmatpush3.bf16.msra.mxu1 %v338_v10 }
  0x3d   :  { %315 = vmatprep.subr.bf16.mxu1 %v436_v0 }
  0x40   :  { %316 = vmatpush3.bf16.msra.mxu1 %v339_v11 }
  0x41   :  { %317 = vmatprep.subr.bf16.mxu1 %v436_v0 }
  0x44   :  { %318 = vmatpush3.bf16.msra.mxu1 %v340_v12 }
  0xef   :  { %v124_v14 = vpop.f32.mrf.mxu0 }
  0xf0   :  { %v125_v15 = vadd.f32 %v270_v13, %v124_v14 }
  0xf1   :  { %v301_v16 = vpop.f32.mrf.mxu0 }
  0xf2   :  { %v130_v17 = vmax.f32 %v125_v15, 0.0 }
  0xf3   :  { %v127_v18 = vpop.f32.mrf.mxu0 }
  0xf4   :  { %v131_v19 = vpack.c.bf16 %v130_v17, %v130_v17 }
  0xf5   :  { %v302_v20 = vpop.f32.mrf.mxu0 }
  0xf6   :  { %320 = vmatmul.mubr.bf16.vlgmr.msra.gmra.mxu1 %v131_v19 }
 0x1b6   :  { %v237_v22 = vpop.f32.mrf.mxu1 }
 0x1b7   :  { %v238_v23 = vadd.f32 %v274_v21, %v237_v22 }
 0x1b8   :  { %v321_v24 = vpop.f32.mrf.mxu1 }
 0x1b9   :  { %243 = vmax.xlane.f32.xlu0 %v238_v23 }
 0x1ba   :  { %v240_v25 = vpop.f32.mrf.mxu1 }
 0x1bc   :  { %v322_v26 = vpop.f32.mrf.mxu1 }
 0x242   :  { %v244_v27 = vpop.xlane.xlu0 %243 }
 0x243   :  { %v245_v28 = vsub.f32 %v238_v23, %v244_v27 }
 0x245   :  { %v246_v29 = vmul.f32 1.442695, %v245_v28 }
 0x247   :  { %341 = vpow2.f32 %v246_v29 }
 0x254   :  { %v342_v30 = vpop.eup %341 }
 0x255   :  { %248 = vadd.xlane.f32.xlu0 %v342_v30 }
 0x2de   :  { %v249_v31 = vpop.xlane.xlu0 %248 }
 0x2df   :  { %343 = vrcp.f32 %v249_v31 }
 0x2ec   :  { %v344_v32 = vpop.eup %343 }
 0x2ed   :  { %v251_v33 = vmul.f32 %v344_v32, %v342_v30 }
 0x2ef   :  { %v252_v34 = vpack.c.bf16 %v251_v33, %v251_v33 }
 0x2f1   :  { %253 = vst [vmem:[#allocation8] sm:$0xf] %v252_v34 }
 0x2f2   :  { %416 = shalt.err (!%p413_p5)
}
 0x2f3   :  { %263 = dma.vmem_to_hbm [thread:$0]  %s261_s11, 64, %s492_s5, [#allocation4]  }
 0x2f4   :  { %429 = dma.done.wait [#allocation4], 64  }
 0x2f5   :  { %430 = vsyncadd [#allocation4], 4294967232 }
 0x2f6   :  { %267 = vsyncpa [#allocation3], 1 }
 0x2f7   :  { %268 = vsyncpa [#allocation6], 1 }
 0x2f8   :  { %269 = vsyncpa [#allocation4], 1 }

</bundles_post_ra>
